<compile_context>
chip_gen: v5e
topology: v5e:2x2
jax: 0.10.0
libtpu: 0.0.40
codegen_flags: <defaults>
</compile_context>

<pallas_src>
import functools

import jax
import jax.numpy as jnp
from jax import lax
from jax.experimental import pallas as pl
from jax.experimental.pallas import tpu as pltpu

_SUBLANE = 8
_DMA_WINDOW = 32          # outstanding row-gather DMAs (was 8)
_ONEHOT_MAX_VOCAB = 2048  # one-hot MXU gather for vocab sizes up to this
_UNROLL = 8               # steady-state loop unroll factor


def _round_up(x, m):
    return (x + m - 1) // m * m


@functools.lru_cache(maxsize=1)
def _vmem_capacity_bytes():
    """Per-core VMEM capacity (64 MiB v7x, 128 MiB v5e/v6e); conservative fallback."""
    try:
        info = pltpu.get_tpu_info()
        cap = int(getattr(info, "vmem_capacity_bytes", 0) or 0)
        if cap > 0:
            return min(cap, 128 * 1024 * 1024)
    except Exception:
        pass
    return 64 * 1024 * 1024


def _pick_tn(n, token_block):
    """Token-block size: full extent if small; else a multiple of 8 near
    token_block that divides n (no padded tokens / no trailing slice copy)."""
    if n <= token_block:
        return n
    tb = max(_SUBLANE, (token_block // _SUBLANE) * _SUBLANE)
    t = tb
    while t >= max(_SUBLANE, tb // 2):
        if n % t == 0:
            return t
        t -= _SUBLANE
    return tb  # no good divisor near token_block: pad the last block


def _onehot_kernel(ids_ref, table_ref, out_ref):
    # ids_ref: (tn, 1) int32 VMEM; table_ref: (V, E) VMEM (resident); out_ref: (tn, E)
    ids = ids_ref[...]
    v = table_ref.shape[0]
    iota = lax.broadcasted_iota(jnp.int32, (ids.shape[0], v), 1)
    onehot = (iota == ids).astype(table_ref.dtype)
    out_ref[...] = jnp.dot(
        onehot, table_ref[...], preferred_element_type=jnp.float32
    ).astype(out_ref.dtype)


def _dma_gather_kernel(ids_ref, table_ref, out_ref, sems):
    # ids_ref:   (n_pad,) int32, SMEM (scalar prefetch)
    # table_ref: (V, E) table — HBM ref (pl.ANY) or a VMEM-resident block
    # out_ref:   (tn, E) VMEM output block for this grid step
    # sems:      (_DMA_WINDOW,) DMA semaphores
    tn = out_ref.shape[0]              # static
    base = pl.program_id(0) * tn       # first token of this block
    w = _DMA_WINDOW

    def start_copy(t, row):
        pltpu.make_async_copy(
            table_ref.at[pl.ds(row, 1), :],   # one table row (HBM or VMEM)
            out_ref.at[pl.ds(t, 1), :],       # its slot in the output block
            sems.at[t % w],
        ).start()

    def wait_copy(t):
        # Dummy descriptor: only the semaphore slot + transfer size matter.
        pltpu.make_async_copy(
            table_ref.at[pl.ds(0, 1), :],
            out_ref.at[pl.ds(0, 1), :],
            sems.at[t % w],
        ).wait()

    n_prime = min(w, tn)
    for t in range(n_prime):                   # prime the DMA window (static)
        start_copy(t, ids_ref[base + t])

    if tn > w:
        def steady(t, carry):
            # Hoist the SMEM id read above the wait (wait breaks sst->sld fwd).
            row = ids_ref[base + t]
            wait_copy(t - w)                   # slot (t - w) % w == t % w
            start_copy(t, row)
            return carry
        lax.fori_loop(w, tn, steady, 0, unroll=_UNROLL)

    for t in range(max(tn - w, 0), tn):        # drain (static, <= window waits)
        wait_copy(t)


@functools.partial(jax.jit, static_argnames=("token_block", "force_path"))
def embedding_forward(x, table, *, token_block=1024, force_path=None):
    """x: (B, S) int token ids; table: (V, E) float. Returns (B, S, E)."""
    B, S = x.shape
    V, E = table.shape
    N = B * S
    dtype = table.dtype
    itemsize = jnp.dtype(dtype).itemsize

    # Clamp ids (jnp-gather semantics; also keeps row DMAs in bounds).
    ids = jnp.clip(x.reshape(N).astype(jnp.int32), 0, V - 1)

    cap = _vmem_capacity_bytes()
    vmem_limit = (cap * 3) // 4              # ~48 MiB on v7x / ~96 MiB on v5e,v6e
    fast_budget = vmem_limit - (6 << 20)     # slack for pipeline buffers / temps

    table_bytes = V * E * itemsize
    tn = _pick_tn(N, token_block)
    # Full-table blocked input is double-buffered; output block is double-buffered.
    vmem_need = 2 * table_bytes + 2 * tn * E * itemsize

    if force_path is not None:
        path = force_path
    elif vmem_need <= fast_budget and V <= _ONEHOT_MAX_VOCAB:
        path = "onehot"
    elif vmem_need <= fast_budget:
        path = "vmem_gather"
    else:
        path = "hbm_gather"

    if path == "onehot":
        # Bound the (tn, V) one-hot temporaries.
        tn = _pick_tn(N, min(token_block, 512))

    n_pad = _round_up(N, tn)
    if n_pad != N:
        ids = jnp.pad(ids, (0, n_pad - N))   # pad with id 0 (valid row)

    grid = (n_pad // tn,)
    out_shape = jax.ShapeDtypeStruct((n_pad, E), dtype)
    compiler_params = pltpu.CompilerParams(
        # TODO(synk): on v7x verify 2-TC split; switch to pltpu.CORE_PARALLEL if not.
        dimension_semantics=("parallel",),
        vmem_limit_bytes=int(vmem_limit),
    )

    if path == "onehot":
        out = pl.pallas_call(
            _onehot_kernel,
            out_shape=out_shape,
            grid=grid,
            in_specs=[
                pl.BlockSpec((tn, 1), lambda i: (i, 0)),   # ids block (VMEM)
                pl.BlockSpec((V, E), lambda i: (0, 0)),    # whole table, VMEM-resident
            ],
            out_specs=pl.BlockSpec((tn, E), lambda i: (i, 0)),
            compiler_params=compiler_params,
            cost_estimate=pl.CostEstimate(
                flops=2 * n_pad * V * E,
                transcendentals=0,
                bytes_accessed=table_bytes + n_pad * E * itemsize + n_pad * 4,
            ),
        )(ids.reshape(n_pad, 1), table)
    else:
        if path == "vmem_gather":
            table_spec = pl.BlockSpec((V, E), lambda i, ids_p: (0, 0))  # VMEM-resident
            bytes_accessed = table_bytes + n_pad * E * itemsize + n_pad * 4
        else:  # "hbm_gather"
            table_spec = pl.BlockSpec(memory_space=pl.ANY)              # stays in HBM
            bytes_accessed = 2 * n_pad * E * itemsize + n_pad * 4
        out = pl.pallas_call(
            _dma_gather_kernel,
            out_shape=out_shape,
            grid_spec=pltpu.PrefetchScalarGridSpec(
                num_scalar_prefetch=1,          # ids -> SMEM
                grid=grid,
                in_specs=[table_spec],
                out_specs=pl.BlockSpec((tn, E), lambda i, ids_p: (i, 0)),
                scratch_shapes=[pltpu.SemaphoreType.DMA((_DMA_WINDOW,))],
            ),
            compiler_params=compiler_params,
            cost_estimate=pl.CostEstimate(
                flops=0, transcendentals=0, bytes_accessed=bytes_accessed),
        )(ids, table)

    if n_pad != N:
        out = out[:N]
    return out.reshape(B, S, E)


if __name__ == "__main__":
    root = jax.random.PRNGKey(0)

    def run_case(idx, vocab_sz, embed_sz, batch, seq, force_path=None):
        k_ids, k_tab = jax.random.split(jax.random.fold_in(root, idx))
        x = jax.random.randint(k_ids, (batch, seq), 0, vocab_sz, dtype=jnp.int32)
        table = jax.random.normal(k_tab, (vocab_sz, embed_sz), dtype=jnp.float32)
        out = jax.block_until_ready(
            embedding_forward(x, table, force_path=force_path))
        ref = table[x]  # same semantics as nn.Embedding for valid ids
        assert out.shape == (batch, seq, embed_sz)
        assert jnp.allclose(out, ref, atol=1e-6), f"mismatch vs reference (case {idx})"

    # Small demo consistent with the module constructor (vocab_sz, embed_sz):
    run_case(0, vocab_sz=64, embed_sz=32, batch=2, seq=8)              # one-hot MXU path
    # Exercise the other dispatch paths at small shapes:
    run_case(1, vocab_sz=3000, embed_sz=32, batch=2, seq=24)           # VMEM-resident gather
    run_case(2, vocab_sz=64, embed_sz=32, batch=2, seq=8,
             force_path="hbm_gather")                                  # HBM row-DMA gather

    print("KERNEL_OK")
</pallas_src>

<mosaic_0001>
module attributes {stable_mosaic.version = 11 : i64} {
  func.func @_onehot_kernel(%arg0: i32, %arg1: memref<16x1xi32, #tpu.memory_space<vmem>>, %arg2: memref<64x32xf32, #tpu.memory_space<vmem>>, %arg3: memref<16x32xf32, #tpu.memory_space<vmem>>) attributes {dimension_semantics = [#tpu.dimension_semantics<parallel>], iteration_bounds = array<i64: 1>, scalar_prefetch = 0 : i64, scratch_operands = 0 : i64, tpu.core_type = #tpu.core_type<tc>, window_params = [{transform_indices = @transform_0, window_bounds = array<i64: 16, 1>}, {pipeline_mode = #tpu.pipeline_mode<synchronous>, transform_indices = @transform_1, window_bounds = array<i64: 64, 32>}, {transform_indices = @transform_2, window_bounds = array<i64: 16, 32>}]} {
    %c0 = arith.constant 0 : index
    %c0_0 = arith.constant 0 : index
    %0 = vector.load %arg1[%c0, %c0_0] : memref<16x1xi32, #tpu.memory_space<vmem>>, vector<16x1xi32>
    %1 = tpu.iota {dimensions = array<i32: 1>} : vector<16x64xi32>
    %2 = vector.broadcast %0 : vector<16x1xi32> to vector<16x64xi32>
    %3 = arith.cmpi eq, %1, %2 : vector<16x64xi32>
    %4 = arith.extui %3 : vector<16x64xi1> to vector<16x64xi32>
    %5 = arith.sitofp %4 : vector<16x64xi32> to vector<16x64xf32>
    %c0_1 = arith.constant 0 : index
    %c0_2 = arith.constant 0 : index
    %6 = vector.load %arg2[%c0_1, %c0_2] : memref<64x32xf32, #tpu.memory_space<vmem>>, vector<64x32xf32>
    %cst = arith.constant dense<0.000000e+00> : vector<16x32xf32>
    %7 = tpu.matmul %5, %6, %cst {dimension_numbers = #tpu.dot_dimension_numbers<[1], [0], [0], [1], [0, 0, 1, 1], [], []>} : vector<16x64xf32>, vector<64x32xf32>, vector<16x32xf32> -> vector<16x32xf32>
    %c0_3 = arith.constant 0 : index
    %c0_4 = arith.constant 0 : index
    %8 = vector.load %arg3[%c0_3, %c0_4] : memref<16x32xf32, #tpu.memory_space<vmem>>, vector<16x32xf32>
    tpu.vector_store %arg3[%c0_3, %c0_4], %7 {strides = array<i32>} : memref<16x32xf32, #tpu.memory_space<vmem>>, vector<16x32xf32>,
    return
  }
  func.func @transform_0(%arg0: i32) -> (i32, i32) {
    %c0_i32 = arith.constant 0 : i32
    %c0_i32_0 = arith.constant 0 : i32
    return %arg0, %c0_i32 : i32, i32
  }
  func.func @transform_1(%arg0: i32) -> (i32, i32) {
    %c0_i32 = arith.constant 0 : i32
    %c0_i32_0 = arith.constant 0 : i32
    %c0_i32_1 = arith.constant 0 : i32
    return %c0_i32, %c0_i32_0 : i32, i32
  }
  func.func @transform_2(%arg0: i32) -> (i32, i32) {
    %c0_i32 = arith.constant 0 : i32
    %c0_i32_0 = arith.constant 0 : i32
    return %arg0, %c0_i32 : i32, i32
  }
}

</mosaic_0001>

<bundles_post_ra>
// kernel: embedding_forward.1
= control target key start
LH: loop header
LB: loop body
LE: loop exit
PB: predicated region body
PF: predicated region fallthrough
CT: control target
= control target key end

     0   :  { %v131_v2 = vmov 0   ;;  %s184_s0 = inlined_call_operand.vmem [shape: s32[16,1], index: 0, kind: input, shape index: {}]   ;;  %s185_s1 = inlined_call_operand.vmem [shape: f32[64,32], index: 1, kind: input, shape index: {}]   ;;  %s186_s2 = inlined_call_operand.hbm [shape: f32[16,32], index: 2, kind: output, shape index: {}]  }
   0x1   :  { %v12_v0 = vld [vmem:[%s184_s0] sm:$0xff]  ;;  %v35_v1 = vld [vmem:[%s185_s1 + $0x38] sm:$0xff]  ;;  %104 = vset.pattern.permute.xlu0 %v131_v2  ;;  %v34_v3 = vld [vmem:[%s185_s1 + $0x30] sm:$0xff] }
   0x2   :  { %51 = vmatpush.msra.mxu0 %v35_v1  ;;  %17 = vperm.xlu0 %104, %v12_v0   ;;  %v33_v4 = vld [vmem:[%s185_s1 + $0x28] sm:$0xff] }
   0x3   :  { %91 = vmatpush.msra.mxu1 %v35_v1 }
   0x4   :  { %52 = vmatpush.msra.mxu0 %v34_v3 }
   0x5   :  { %7 = vsyncpa [#allocation3], 0  ;;  %v32_v5 = vld [vmem:[%s185_s1 + $0x20] sm:$0xff]  ;;  %92 = vmatpush.msra.mxu1 %v34_v3  ;;  %v31_v6 = vld [vmem:[%s185_s1 + $0x18] sm:$0xff]  ;;  %v14_v11 = vlaneseq  ;;  %vm36_vm0 = vcmask 523264   ;;  %v132_v14 = vmov 0.0  }
   0x6   :  { %53 = vmatpush.msra.mxu0 %v33_v4  ;;  %v13_v7 = vld [vmem:[%s184_s0 + $0x8] sm:$0xff]  ;;  %v30_v8 = vld [vmem:[%s185_s1 + $0x10] sm:$0xff]  ;;  %v28_v10 = vld [vmem:[%s185_s1] sm:$0xff]  ;;  %vm66_vm3 = vcmask 261120   ;;  %s133_s0 = smov [#allocation2]   ;;  %s75_s3 = sshll.u32 %s186_s2, 4  ;;  %s76_s3 = int_to_ptr.hbm [resolvable:$true] %s75_s3 }
   0x7   :  { %93 = vmatpush.msra.mxu1 %v33_v4  ;;  %v29_v9 = vld [vmem:[%s185_s1 + $0x8] sm:$0xff]  ;;  %v15_v12 = vand.u32 127, %v14_v11  ;;  %s73_s29 = sshll.u32 %s133_s0, 4  ;;  %s134_s4 = smov 128   ;;  %s74_s29 = int_to_ptr.vmem [resolvable:$true] %s73_s29 }
   0x8   :  { %54 = vmatpush.msra.mxu0 %v32_v5  ;;  %s135_s5 = smov 8  }
   0x9   :  { %94 = vmatpush.msra.mxu1 %v32_v5 }
   0xa   :  { %55 = vmatpush.msra.mxu0 %v31_v6  ;;  %20 = vperm.xlu0 %104, %v13_v7  }
   0xb   :  { %95 = vmatpush.msra.mxu1 %v31_v6 }
   0xc   :  { %56 = vmatpush.msra.mxu0 %v30_v8 }
   0xd   :  { %96 = vmatpush.msra.mxu1 %v30_v8 }
   0xe   :  { %57 = vmatpush.msra.mxu0 %v29_v9 }
   0xf   :  { %97 = vmatpush.msra.mxu1 %v29_v9 }
  0x10   :  { %58 = vmatpush.msra.mxu0 %v28_v10 }
  0x11   :  { %98 = vmatpush.msra.mxu1 %v28_v10 }
  0x74   :  { %v18_v13 = vpop.permute.xlu0 %17 }
  0x75   :  { %vm22_vm1 = vcmp.eq.s32.totalorder %v15_v12, %v18_v13 }
  0x76   :  { %v87_v15 = vsel %vm22_vm1, 1.0, %v132_v14 }
  0x77   :  { %89 = vmatmul.msk.f32.vlgmr.msra.gmra.mxu0 %vm36_vm0, %v87_v15 }
  0x7c   :  { %v21_v16 = vpop.permute.xlu0 %20 }
  0x7d   :  { %vm23_vm2 = vcmp.eq.s32.totalorder %v15_v12, %v21_v16 }
  0x7e   :  { %v88_v17 = vsel %vm23_vm2, 1.0, %v132_v14 }
  0x7f   :  { %90 = vmatmul.msk.f32.vlgmr.msra.gmra.mxu1 %vm36_vm0, %v88_v17 }
  0xf4   :  { %v60_v18 = vpop.f32.mrf.mxu0 }
  0xf5   :  { %67 = vst.msk [vmem:[#allocation2] sm:$0xff] %vm66_vm3, %v60_v18 }
  0xfc   :  { %v63_v19 = vpop.f32.mrf.mxu1 }
  0xfd   :  { %68 = vst.msk [vmem:[#allocation2 + $0x8] sm:$0xff] %vm66_vm3, %v63_v19 }
  0xfe   :  { %81 = dma.vmem_to_hbm [thread:$0]  %s74_s29, 256, %s76_s3, [#allocation3], %s134_s4, %s134_s4, %s135_s5  }
  0xff   :  { %129 = dma.done.wait [#allocation3], 256  }
 0x100   :  { %130 = vsyncadd [#allocation3], 4294967040 }
 0x101   :  { %86 = vsyncpa [#allocation3], 1 }

</bundles_post_ra>
